<compile_context>
chip_gen: v7x
topology: tpu7x:2x2x1
jax: 0.10.0
libtpu: 0.0.40
codegen_flags: <defaults>
</compile_context>

<pallas_src>
import jax
import jax.numpy as jnp
from jax.experimental import pallas as pl
from jax.experimental.pallas import tpu as pltpu


def _copy_kernel(x_ref, o_ref):
    # forward(input) -> input : elementwise copy of the current tile.
    o_ref[...] = x_ref[...]


def _round_up(n, m):
    return ((n + m - 1) // m) * m


_LANE_CANDIDATES = (1024, 512, 256, 128)   # lane-dense widths (multiples of 128 -> unmasked vst)
_TARGET_BLOCK_BYTES = 4 * 1024 * 1024      # ~4 MiB/block: 2x(in)+2x(out) double-buffered = 16 MiB,
                                           # well inside v7x's 32 MiB scoped-VMEM default.


def base_loss_forward(x, *, use_kernel=True):
    """BaseLoss.forward == identity.

    use_kernel=False is the recommended production path (no HBM traffic at all).
    The kernel path flattens the tensor to a lane-dense (rows, lanes) slab with a
    lane width chosen to avoid padding whenever possible, then streams it through
    a 'parallel' grid of ~4 MiB blocks so BlockSpec double-buffering overlaps the
    DMAs and both v7x TensorCores can participate for large inputs.
    """
    if not use_kernel:
        return x  # zero-cost identity (highest-value optimization)

    orig_shape = x.shape
    orig_dtype = x.dtype
    total = int(x.size)
    if total == 0:
        return x

    itemsize = jnp.dtype(orig_dtype).itemsize
    # dtype-aware sublane minimum: f32 -> 8, bf16/f16 -> 16, int8/fp8 -> 32.
    sublane_min = {4: 8, 2: 16, 1: 32}.get(itemsize, 8)

    # Prefer a lane width that exactly divides the element count: no pad / slice
    # (each of which would add a full extra HBM pass over the tensor).
    lanes = None
    for cand in _LANE_CANDIDATES:
        if total % cand == 0:
            lanes = cand
            break
    if lanes is None:
        lanes = min(_LANE_CANDIDATES[0], _round_up(total, 128))

    rows = pl.cdiv(total, lanes)
    padded_total = rows * lanes

    flat = x.reshape(-1)
    if padded_total != total:
        flat = jnp.pad(flat, (0, padded_total - total))
    x2 = flat.reshape(rows, lanes)

    # Rows per block: sublane-aligned, capped at ~4 MiB (measured sweet spot for
    # the HBM roofline with BlockSpec double buffering).
    max_rows = max(
        sublane_min,
        (_TARGET_BLOCK_BYTES // (lanes * itemsize)) // sublane_min * sublane_min,
    )

    if rows <= max_rows:
        # Single full-array block (block_shape == array shape is exempt from the
        # (8,128) divisibility rule): one DMA in, one DMA out, zero row padding.
        tile_rows = rows
        grid = (1,)
    else:
        # Multi-step streaming grid.  pl.cdiv grids mask the partial trailing
        # block, so the row axis never needs padding.
        tile_rows = max_rows
        grid = (pl.cdiv(rows, tile_rows),)

    out2 = pl.pallas_call(
        _copy_kernel,
        out_shape=jax.ShapeDtypeStruct((rows, lanes), orig_dtype),
        grid_spec=pltpu.PrefetchScalarGridSpec(
            num_scalar_prefetch=0,
            grid=grid,
            in_specs=[pl.BlockSpec((tile_rows, lanes), lambda i: (i, 0))],
            out_specs=pl.BlockSpec((tile_rows, lanes), lambda i: (i, 0)),
        ),
        compiler_params=pltpu.CompilerParams(
            dimension_semantics=("parallel",),   # megacore-shard rows on multi-TC chips
        ),
        # NOTE: input_output_aliases={0: 0} deliberately omitted: with non-donated
        # inputs XLA inserts a defensive copy, which would ADD HBM traffic.
    )(x2)

    out_flat = out2.reshape(-1)
    if padded_total != total:
        out_flat = out_flat[:total]
    return out_flat.reshape(orig_shape)


class BaseLossState:
    """Host-side bookkeeping mirroring BaseLoss.update_running_loss.

    Plain Python state (matches PyTorch's .item() semantics); not part of the
    kernel hot path.
    """

    def __init__(self):
        self.iteration = 0
        self.running_loss = 0.0
        self.mean_running_loss = 0.0

    def update_running_loss(self, loss_scalar):
        self.iteration += 1
        self.running_loss += float(loss_scalar)
        self.mean_running_loss = self.running_loss / self.iteration


if __name__ == "__main__":
    key = jax.random.PRNGKey(0)
    k0, k1, k2 = jax.random.split(key, 3)

    # Small NCHW-style input consistent with a loss module's typical input.
    # total = 2048 -> lanes=1024 divides exactly -> single (2,1024) block, no padding.
    x = jax.random.normal(k0, (2, 4, 16, 16), dtype=jnp.float32)
    y = jax.block_until_ready(base_loss_forward(x))
    assert y.shape == x.shape and y.dtype == x.dtype
    assert bool(jnp.all(y == x))

    # Odd-sized bf16 input exercises the lane-padding + dtype-aware path.
    x_odd = jax.random.normal(k1, (3, 5, 7), dtype=jnp.bfloat16)
    y_odd = jax.block_until_ready(base_loss_forward(x_odd))
    assert y_odd.shape == x_odd.shape and y_odd.dtype == x_odd.dtype
    assert bool(jnp.all(y_odd == x_odd))

    # Moderate input exercising the multi-step streaming grid with a partial
    # trailing block (rows=1280, tile_rows=1024, grid=2) and no padding at all.
    x_mid = jax.random.normal(k2, (2, 1024, 640), dtype=jnp.float32)
    y_mid = jax.block_until_ready(base_loss_forward(x_mid))
    assert y_mid.shape == x_mid.shape and y_mid.dtype == x_mid.dtype
    assert bool(jnp.all(y_mid == x_mid))

    # Zero-cost shortcut path (the recommended production behavior).
    y_fast = base_loss_forward(x, use_kernel=False)
    assert y_fast is x

    # Exercise the running-loss bookkeeping (host-side, matches PyTorch semantics).
    state = BaseLossState()
    state.update_running_loss(jnp.sum(y))
    state.update_running_loss(jnp.mean(y))

    print("KERNEL_OK")
</pallas_src>

<mosaic_0001>
module attributes {stable_mosaic.version = 11 : i64} {
  func.func @_copy_kernel(%arg0: i32, %arg1: memref<2x1024xf32, #tpu.memory_space<vmem>>, %arg2: memref<2x1024xf32, #tpu.memory_space<vmem>>) attributes {dimension_semantics = [#tpu.dimension_semantics<parallel>], iteration_bounds = array<i64: 1>, scalar_prefetch = 0 : i64, scratch_operands = 0 : i64, tpu.core_type = #tpu.core_type<tc>, window_params = [{transform_indices = @transform_0, window_bounds = array<i64: 2, 1024>}, {transform_indices = @transform_1, window_bounds = array<i64: 2, 1024>}]} {
    %c0 = arith.constant 0 : index
    %c0_0 = arith.constant 0 : index
    %0 = vector.load %arg1[%c0, %c0_0] : memref<2x1024xf32, #tpu.memory_space<vmem>>, vector<2x1024xf32>
    %c0_1 = arith.constant 0 : index
    %c0_2 = arith.constant 0 : index
    %1 = vector.load %arg2[%c0_1, %c0_2] : memref<2x1024xf32, #tpu.memory_space<vmem>>, vector<2x1024xf32>
    tpu.vector_store %arg2[%c0_1, %c0_2], %0 {strides = array<i32>} : memref<2x1024xf32, #tpu.memory_space<vmem>>, vector<2x1024xf32>,
    return
  }
  func.func @transform_0(%arg0: i32) -> (i32, i32) {
    %c0_i32 = arith.constant 0 : i32
    %c0_i32_0 = arith.constant 0 : i32
    return %arg0, %c0_i32 : i32, i32
  }
  func.func @transform_1(%arg0: i32) -> (i32, i32) {
    %c0_i32 = arith.constant 0 : i32
    %c0_i32_0 = arith.constant 0 : i32
    return %arg0, %c0_i32 : i32, i32
  }
}

</mosaic_0001>

<bundles_post_ra>
// kernel: tpu_custom_call.1
= control target key start
LH: loop header
LB: loop body
LE: loop exit
PB: predicated region body
PF: predicated region fallthrough
CT: control target
= control target key end

     0   :  { %6 = vsyncpa [#allocation3], 0  ;;  %s126_s0 = inlined_call_operand.hbm [shape: f32[2,1024], index: 0, kind: input, shape index: {}]   ;;  %s127_s1 = inlined_call_operand.hbm [shape: f32[2,1024], index: 1, kind: output, shape index: {}]  }
   0x1   :  { %7 = vsyncpa [#allocation4], 0  ;;  %s90_s6 = smov [#allocation2]   ;;  %s42_s10 = scalar_lea.hbm %s126_s0, 256 }
   0x2   :  { %s14_s7 = sshll.u32 %s90_s6, 4  ;;  %p43_p0 = scmp.ne.s32.totalorder %s126_s0, %s42_s10  ;;  %s15_s7 = int_to_ptr.vmem [resolvable:$true] %s14_s7 }
   0x3   :  { %p46_p1 = scmp.lt.u32.totalorder %s42_s10, %s126_s0 }
   0x5   :  { %p48_p2 = pnand %p46_p1, %p43_p0 }
   0x7   :  { %51 = shalt.err (!%p48_p2)
}
   0x8   :  { %s52_s15 = scalar_lea.vmem %s15_s7, 256  ;;  %p57_p4 = scmp.lt.s32.totalorder %s15_s7, %s15_s7 }
   0x9   :  { %p53_p3 = scmp.ne.s32.totalorder %s15_s7, %s52_s15  ;;  %p58_p5 = scmp.lt.s32.totalorder %s52_s15, %s52_s15 }
   0xb   :  { %p59_p6 = por %p58_p5, %p57_p4 }
   0xd   :  { %p60_p7 = pnand %p59_p6, %p53_p3 }
   0xf   :  { %63 = shalt.err (!%p60_p7)
}
  0x10   :  { %17 = dma.hbm_to_vmem [thread:$0]  %s126_s0, 256, %s15_s7, [#allocation3]  }
  0x11   :  { %86 = dma.done.wait [#allocation3], 256  }
  0x12   :  { %87 = vsyncadd [#allocation3], 4294967040  ;;  %s91_s18 = smov [#allocation5]   ;;  %v21_v0 = vld [vmem:[#allocation2] sm:$0xff]  ;;  %v22_v1 = vld [vmem:[#allocation2 + $0x8] sm:$0xff] }
  0x13   :  { %s31_s19 = sshll.u32 %s91_s18, 4  ;;  %23 = vst [vmem:[#allocation5] sm:$0xff] %v21_v0  ;;  %24 = vst [vmem:[#allocation5 + $0x8] sm:$0xff] %v22_v1  ;;  %s32_s19 = int_to_ptr.vmem [resolvable:$true] %s31_s19 }
  0x14   :  { %s64_s20 = scalar_lea.vmem %s32_s19, 256  ;;  %p69_p9 = scmp.lt.s32.totalorder %s32_s19, %s32_s19 }
  0x15   :  { %p65_p8 = scmp.ne.s32.totalorder %s32_s19, %s64_s20  ;;  %p70_p10 = scmp.lt.s32.totalorder %s64_s20, %s64_s20 }
  0x17   :  { %p71_p11 = por %p70_p10, %p69_p9 }
  0x19   :  { %p72_p12 = pnand %p71_p11, %p65_p8 }
  0x1b   :  { %75 = shalt.err (!%p72_p12)
}
  0x1c   :  { %s76_s0 = scalar_lea.hbm %s127_s1, 256 }
  0x1d   :  { %p77_p13 = scmp.ne.s32.totalorder %s127_s1, %s76_s0  ;;  %p80_p0 = scmp.lt.u32.totalorder %s76_s0, %s127_s1 }
  0x1f   :  { %p82_p1 = pnand %p80_p0, %p77_p13 }
  0x21   :  { %85 = shalt.err (!%p82_p1)
}
  0x22   :  { %34 = dma.vmem_to_hbm [thread:$0]  %s32_s19, 256, %s127_s1, [#allocation4]  }
  0x23   :  { %88 = dma.done.wait [#allocation4], 256  }
  0x24   :  { %89 = vsyncadd [#allocation4], 4294967040 }
  0x25   :  { %38 = vsyncpa [#allocation3], 1 }
  0x26   :  { %39 = vsyncpa [#allocation4], 1 }

</bundles_post_ra>
